<compile_context>
chip_gen: v5e
topology: v5e:2x2
jax: 0.10.0
libtpu: 0.0.40
codegen_flags: <defaults>
</compile_context>

<pallas_src>
import functools

import jax
import jax.numpy as jnp
from jax.experimental import pallas as pl
from jax.experimental.pallas import tpu as pltpu


def resnet_block_kernel(x_ref, w1_ref, b1_ref, w2_ref, b2_ref, o_ref):
    """o = relu(x @ W1 + b1) @ W2 + b2 + x, for one (TM, H) batch tile."""
    x = x_ref[...]                                        # f32 (TM, H); kept for residual
    h = jnp.dot(x.astype(jnp.bfloat16), w1_ref[...],      # bf16 MXU, f32 accumulate
                preferred_element_type=jnp.float32)
    h = jnp.maximum(h + b1_ref[...], 0.0)                 # bias + ReLU in f32 (VPU)
    y = jnp.dot(h.astype(jnp.bfloat16), w2_ref[...],
                preferred_element_type=jnp.float32)
    o_ref[...] = (y + b2_ref[...] + x).astype(o_ref.dtype)  # residual: module(x) + x


def _round_up(n: int, m: int) -> int:
    return ((n + m - 1) // m) * m


@functools.partial(jax.jit, static_argnames=("tm",))
def resnet_forward(x, w1, b1, w2, b2, *, tm=256):
    """Fused residual MLP block.

    x  : [B, H] f32
    w1 : [H, H]  (pre-transposed: kernel computes x @ w1, i.e. torch's x @ W1.T)
    b1 : [H] or [1, H]
    w2 : [H, H]
    b2 : [H] or [1, H]
    """
    B, H = x.shape
    Hp = _round_up(H, 128)                # lane-dense last dim
    TM = min(tm, _round_up(B, 8))         # sublane-aligned batch tile
    Bp = _round_up(B, TM)

    def pad2(a, rows, cols):
        a = a.reshape((-1, a.shape[-1]))
        return jnp.pad(a, ((0, rows - a.shape[0]), (0, cols - a.shape[1])))

    xp = pad2(x, Bp, Hp).astype(jnp.float32)
    w1p = pad2(w1, Hp, Hp).astype(jnp.bfloat16)   # bf16 weights: MXU peak, 1/2 HBM bytes
    w2p = pad2(w2, Hp, Hp).astype(jnp.bfloat16)
    b1p = pad2(b1, 1, Hp).astype(jnp.float32)
    b2p = pad2(b2, 1, Hp).astype(jnp.float32)

    grid = (Bp // TM,)

    cost = pl.CostEstimate(
        flops=4 * Bp * Hp * Hp,                                   # two matmuls
        bytes_accessed=3 * Bp * Hp * 4 + 2 * Hp * Hp * 2 + 2 * Hp * 4,
        transcendentals=0,
    )

    # TODO(synk): once resident bf16 weights (4*H^2 bytes) outgrow the VMEM
    # budget (H beyond ~2.5K on v7x's 64 MiB), add an N-tiling grid axis over
    # W2 columns with a VMEM scratch for the intermediate h.
    out = pl.pallas_call(
        resnet_block_kernel,
        out_shape=jax.ShapeDtypeStruct((Bp, Hp), x.dtype),
        grid=grid,
        in_specs=[
            pl.BlockSpec((TM, Hp), lambda i: (i, 0)),   # x: streamed, double-buffered
            pl.BlockSpec((Hp, Hp), lambda i: (0, 0)),   # W1: VMEM-resident across tiles
            pl.BlockSpec((1, Hp),  lambda i: (0, 0)),   # b1: resident
            pl.BlockSpec((Hp, Hp), lambda i: (0, 0)),   # W2: VMEM-resident
            pl.BlockSpec((1, Hp),  lambda i: (0, 0)),   # b2: resident
        ],
        out_specs=pl.BlockSpec((TM, Hp), lambda i: (i, 0)),
        compiler_params=pltpu.CompilerParams(
            dimension_semantics=("parallel",),          # megacore shard on v7x
            vmem_limit_bytes=48 << 20,                  # safe within v7x's 64 MiB VMEM
        ),
        cost_estimate=cost,
    )(xp, w1p, b1p, w2p, b2p)

    return out[:B, :H]


def resnet_reference_f32(x, w1, b1, w2, b2):
    h = jnp.maximum(x @ w1 + b1.reshape(1, -1), 0.0)
    return h @ w2 + b2.reshape(1, -1) + x


def resnet_reference_bf16(x, w1, b1, w2, b2):
    # Same precision policy as the kernel: bf16 matmul operands, f32 accumulate.
    h = jnp.dot(x.astype(jnp.bfloat16), w1.astype(jnp.bfloat16),
                preferred_element_type=jnp.float32) + b1.reshape(1, -1)
    h = jnp.maximum(h, 0.0)
    y = jnp.dot(h.astype(jnp.bfloat16), w2.astype(jnp.bfloat16),
                preferred_element_type=jnp.float32) + b2.reshape(1, -1)
    return y + x


if __name__ == "__main__":
    def make_inputs(B, H, key):
        kx, k1, k2, k3, k4 = jax.random.split(key, 5)
        x = jax.random.normal(kx, (B, H), dtype=jnp.float32)
        w1 = jax.random.normal(k1, (H, H), dtype=jnp.float32) / jnp.sqrt(H)
        b1 = jax.random.normal(k2, (H,), dtype=jnp.float32) * 0.1
        w2 = jax.random.normal(k3, (H, H), dtype=jnp.float32) / jnp.sqrt(H)
        b2 = jax.random.normal(k4, (H,), dtype=jnp.float32) * 0.1
        return x, w1, b1, w2, b2

    # Small shapes consistent with the module spec: batch=8, hidden=32.
    args_small = make_inputs(8, 32, jax.random.PRNGKey(0))
    out = jax.block_until_ready(resnet_forward(*args_small))
    assert out.shape == (8, 32)
    assert jnp.allclose(out, resnet_reference_bf16(*args_small), atol=1e-2, rtol=1e-2), \
        "mismatch vs matched-precision reference"
    assert jnp.allclose(out, resnet_reference_f32(*args_small), atol=5e-2, rtol=5e-2), \
        "mismatch vs f32 reference"

    # Hardware-aligned shape exercising the multi-tile batch grid + resident weights.
    args_big = make_inputs(512, 256, jax.random.PRNGKey(1))
    out_big = jax.block_until_ready(resnet_forward(*args_big))
    assert out_big.shape == (512, 256)
    assert jnp.allclose(out_big, resnet_reference_bf16(*args_big), atol=1e-2, rtol=1e-2), \
        "mismatch vs matched-precision reference (large)"

    print("KERNEL_OK")
</pallas_src>

<mosaic_0001>
module attributes {stable_mosaic.version = 11 : i64} {
  func.func @resnet_block_kernel(%arg0: i32, %arg1: memref<8x128xf32, #tpu.memory_space<vmem>>, %arg2: memref<128x128xbf16, #tpu.memory_space<vmem>>, %arg3: memref<1x128xf32, #tpu.memory_space<vmem>>, %arg4: memref<128x128xbf16, #tpu.memory_space<vmem>>, %arg5: memref<1x128xf32, #tpu.memory_space<vmem>>, %arg6: memref<8x128xf32, #tpu.memory_space<vmem>>) attributes {dimension_semantics = [#tpu.dimension_semantics<parallel>], iteration_bounds = array<i64: 1>, scalar_prefetch = 0 : i64, scratch_operands = 0 : i64, tpu.core_type = #tpu.core_type<tc>, window_params = [{transform_indices = @transform_0, window_bounds = array<i64: 8, 128>}, {pipeline_mode = #tpu.pipeline_mode<synchronous>, transform_indices = @transform_1, window_bounds = array<i64: 128, 128>}, {pipeline_mode = #tpu.pipeline_mode<synchronous>, transform_indices = @transform_2, window_bounds = array<i64: 1, 128>}, {pipeline_mode = #tpu.pipeline_mode<synchronous>, transform_indices = @transform_3, window_bounds = array<i64: 128, 128>}, {pipeline_mode = #tpu.pipeline_mode<synchronous>, transform_indices = @transform_4, window_bounds = array<i64: 1, 128>}, {transform_indices = @transform_5, window_bounds = array<i64: 8, 128>}]} {
    %c0 = arith.constant 0 : index
    %c0_0 = arith.constant 0 : index
    %0 = vector.load %arg1[%c0, %c0_0] : memref<8x128xf32, #tpu.memory_space<vmem>>, vector<8x128xf32>
    %1 = arith.truncf %0 : vector<8x128xf32> to vector<8x128xbf16>
    %c0_1 = arith.constant 0 : index
    %c0_2 = arith.constant 0 : index
    %2 = vector.load %arg2[%c0_1, %c0_2] : memref<128x128xbf16, #tpu.memory_space<vmem>>, vector<128x128xbf16>
    %cst = arith.constant dense<0.000000e+00> : vector<8x128xf32>
    %3 = tpu.matmul %1, %2, %cst {dimension_numbers = #tpu.dot_dimension_numbers<[1], [0], [0], [1], [0, 0, 1, 1], [], []>} : vector<8x128xbf16>, vector<128x128xbf16>, vector<8x128xf32> -> vector<8x128xf32>
    %c0_3 = arith.constant 0 : index
    %c0_4 = arith.constant 0 : index
    %4 = vector.load %arg3[%c0_3, %c0_4] : memref<1x128xf32, #tpu.memory_space<vmem>>, vector<1x128xf32>
    %5 = vector.broadcast %4 : vector<1x128xf32> to vector<8x128xf32>
    %6 = arith.addf %3, %5 : vector<8x128xf32>
    %cst_5 = arith.constant 0.000000e+00 : f32
    %7 = vector.broadcast %cst_5 : f32 to vector<8x128xf32>
    %8 = arith.maximumf %6, %7 : vector<8x128xf32>
    %9 = arith.truncf %8 : vector<8x128xf32> to vector<8x128xbf16>
    %c0_6 = arith.constant 0 : index
    %c0_7 = arith.constant 0 : index
    %10 = vector.load %arg4[%c0_6, %c0_7] : memref<128x128xbf16, #tpu.memory_space<vmem>>, vector<128x128xbf16>
    %cst_8 = arith.constant dense<0.000000e+00> : vector<8x128xf32>
    %11 = tpu.matmul %9, %10, %cst_8 {dimension_numbers = #tpu.dot_dimension_numbers<[1], [0], [0], [1], [0, 0, 1, 1], [], []>} : vector<8x128xbf16>, vector<128x128xbf16>, vector<8x128xf32> -> vector<8x128xf32>
    %c0_9 = arith.constant 0 : index
    %c0_10 = arith.constant 0 : index
    %12 = vector.load %arg5[%c0_9, %c0_10] : memref<1x128xf32, #tpu.memory_space<vmem>>, vector<1x128xf32>
    %13 = vector.broadcast %12 : vector<1x128xf32> to vector<8x128xf32>
    %14 = arith.addf %11, %13 : vector<8x128xf32>
    %15 = arith.addf %14, %0 : vector<8x128xf32>
    %c0_11 = arith.constant 0 : index
    %c0_12 = arith.constant 0 : index
    %16 = vector.load %arg6[%c0_11, %c0_12] : memref<8x128xf32, #tpu.memory_space<vmem>>, vector<8x128xf32>
    tpu.vector_store %arg6[%c0_11, %c0_12], %15 {strides = array<i32>} : memref<8x128xf32, #tpu.memory_space<vmem>>, vector<8x128xf32>,
    return
  }
  func.func @transform_0(%arg0: i32) -> (i32, i32) {
    %c0_i32 = arith.constant 0 : i32
    %c0_i32_0 = arith.constant 0 : i32
    return %arg0, %c0_i32 : i32, i32
  }
  func.func @transform_1(%arg0: i32) -> (i32, i32) {
    %c0_i32 = arith.constant 0 : i32
    %c0_i32_0 = arith.constant 0 : i32
    %c0_i32_1 = arith.constant 0 : i32
    return %c0_i32, %c0_i32_0 : i32, i32
  }
  func.func @transform_2(%arg0: i32) -> (i32, i32) {
    %c0_i32 = arith.constant 0 : i32
    %c0_i32_0 = arith.constant 0 : i32
    %c0_i32_1 = arith.constant 0 : i32
    return %c0_i32, %c0_i32_0 : i32, i32
  }
  func.func @transform_3(%arg0: i32) -> (i32, i32) {
    %c0_i32 = arith.constant 0 : i32
    %c0_i32_0 = arith.constant 0 : i32
    %c0_i32_1 = arith.constant 0 : i32
    return %c0_i32, %c0_i32_0 : i32, i32
  }
  func.func @transform_4(%arg0: i32) -> (i32, i32) {
    %c0_i32 = arith.constant 0 : i32
    %c0_i32_0 = arith.constant 0 : i32
    %c0_i32_1 = arith.constant 0 : i32
    return %c0_i32, %c0_i32_0 : i32, i32
  }
  func.func @transform_5(%arg0: i32) -> (i32, i32) {
    %c0_i32 = arith.constant 0 : i32
    %c0_i32_0 = arith.constant 0 : i32
    return %arg0, %c0_i32 : i32, i32
  }
}

</mosaic_0001>

<bundles_post_ra>
// kernel: resnet_forward.1
= control target key start
LH: loop header
LB: loop body
LE: loop exit
PB: predicated region body
PF: predicated region fallthrough
CT: control target
= control target key end

     0   :  { %s405_s0 = inlined_call_operand.vmem [shape: f32[8,128], index: 0, kind: input, shape index: {}]   ;;  %s406_s1 = inlined_call_operand.vmem [shape: bf16[128,128], index: 1, kind: input, shape index: {}]   ;;  %s407_s2 = inlined_call_operand.vmem [shape: f32[1,128], index: 2, kind: input, shape index: {}]   ;;  %s408_s3 = inlined_call_operand.vmem [shape: bf16[128,128], index: 3, kind: input, shape index: {}]   ;;  %s409_s4 = inlined_call_operand.vmem [shape: f32[1,128], index: 4, kind: input, shape index: {}]   ;;  %s410_s5 = inlined_call_operand.hbm [shape: f32[8,128], index: 5, kind: output, shape index: {}]  }
   0x1   :  { %v276_v0 = vld [vmem:[%s406_s1 + $0x38] sm:$0xff]  ;;  %v275_v1 = vld [vmem:[%s406_s1 + $0x30] sm:$0xff]  ;;  %v274_v4 = vld [vmem:[%s406_s1 + $0x28] sm:$0xff] }
   0x2   :  { %91 = vmatpush.bf16.msra.mxu0 %v276_v0  ;;  %v284_v2 = vld [vmem:[%s408_s3 + $0x38] sm:$0xff]  ;;  %v283_v3 = vld [vmem:[%s408_s3 + $0x30] sm:$0xff] }
   0x3   :  { %174 = vmatpush.bf16.msra.mxu1 %v284_v2 }
   0x6   :  { %92 = vmatpush.bf16.msra.mxu0 %v275_v1 }
   0x7   :  { %10 = vsyncpa [#allocation3], 0  ;;  %175 = vmatpush.bf16.msra.mxu1 %v283_v3  ;;  %v282_v5 = vld [vmem:[%s408_s3 + $0x28] sm:$0xff]  ;;  %v273_v6 = vld [vmem:[%s406_s1 + $0x20] sm:$0xff]  ;;  %s314_s29 = smov [#allocation2]   ;;  %s196_s7 = sshll.u32 %s410_s5, 4  ;;  %s197_s7 = int_to_ptr.hbm [resolvable:$true] %s196_s7 }
   0x8   :  { %v281_v7 = vld [vmem:[%s408_s3 + $0x20] sm:$0xff]  ;;  %v272_v8 = vld [vmem:[%s406_s1 + $0x18] sm:$0xff]  ;;  %v271_v10 = vld [vmem:[%s406_s1 + $0x10] sm:$0xff]  ;;  %s194_s30 = sshll.u32 %s314_s29, 4  ;;  %s195_s30 = int_to_ptr.vmem [resolvable:$true] %s194_s30 }
   0x9   :  { %v280_v9 = vld [vmem:[%s408_s3 + $0x18] sm:$0xff]  ;;  %v279_v11 = vld [vmem:[%s408_s3 + $0x10] sm:$0xff]  ;;  %v270_v12 = vld [vmem:[%s406_s1 + $0x8] sm:$0xff] }
   0xa   :  { %93 = vmatpush.bf16.msra.mxu0 %v274_v4  ;;  %v269_v13 = vld [vmem:[%s406_s1] sm:$0xff]  ;;  %v278_v16 = vld [vmem:[%s408_s3 + $0x8] sm:$0xff] }
   0xb   :  { %176 = vmatpush.bf16.msra.mxu1 %v282_v5  ;;  %v21_v14 = vld [vmem:[%s405_s0] sm:$0xff] }
   0xc   :  { %v22_v15 = vpack.c.bf16 %v21_v14, %v21_v14  ;;  %v277_v17 = vld [vmem:[%s408_s3] sm:$0xff] }
   0xd   :  { %v286_v18 = vld [vmem:[%s407_s2] ss:$0 sm:$0xff] }
   0xe   :  { %94 = vmatpush.bf16.msra.mxu0 %v273_v6  ;;  %v287_v24 = vld [vmem:[%s409_s4] ss:$0 sm:$0xff] }
   0xf   :  { %177 = vmatpush.bf16.msra.mxu1 %v281_v7 }
  0x12   :  { %95 = vmatpush.bf16.msra.mxu0 %v272_v8 }
  0x13   :  { %178 = vmatpush.bf16.msra.mxu1 %v280_v9 }
  0x16   :  { %96 = vmatpush.bf16.msra.mxu0 %v271_v10 }
  0x17   :  { %179 = vmatpush.bf16.msra.mxu1 %v279_v11 }
  0x1a   :  { %97 = vmatpush.bf16.msra.mxu0 %v270_v12 }
  0x1b   :  { %180 = vmatpush.bf16.msra.mxu1 %v278_v16 }
  0x1e   :  { %98 = vmatpush.bf16.msra.mxu0 %v269_v13 }
  0x1f   :  { %181 = vmatpush.bf16.msra.mxu1 %v277_v17 }
  0x21   :  { %99 = vmatmul.bf16.vlgmr.msra.gmra.mxu0 %v22_v15 }
  0x9e   :  { %v100_v19 = vpop.f32.mrf.mxu0 }
  0x9f   :  { %v101_v20 = vadd.f32 %v286_v18, %v100_v19 }
  0xa1   :  { %v104_v21 = vmax.f32 %v101_v20, 0.0 }
  0xa3   :  { %v105_v22 = vpack.c.bf16 %v104_v21, %v104_v21 }
  0xa5   :  { %182 = vmatmul.bf16.vlgmr.msra.gmra.mxu1 %v105_v22 }
  0xa6   :  { %v102_v23 = vpop.f32.mrf.mxu0 }
 0x122   :  { %v183_v25 = vpop.f32.mrf.mxu1 }
 0x123   :  { %v184_v26 = vadd.f32 %v287_v24, %v183_v25 }
 0x125   :  { %v187_v27 = vadd.f32 %v184_v26, %v21_v14 }
 0x127   :  { %188 = vst [vmem:[#allocation2] sm:$0xff] %v187_v27 }
 0x128   :  { %199 = dma.vmem_to_hbm [thread:$0]  %s195_s30, 128, %s197_s7, [#allocation3]  }
 0x12a   :  { %v185_v28 = vpop.f32.mrf.mxu1 }
 0x12b   :  { %312 = dma.done.wait [#allocation3], 128  }
 0x12c   :  { %313 = vsyncadd [#allocation3], 4294967168 }
 0x12d   :  { %204 = vsyncpa [#allocation3], 1 }

</bundles_post_ra>
